<compile_context>
chip_gen: v5e
topology: v5e:2x2
jax: 0.10.0
libtpu: 0.0.40
codegen_flags: <defaults>
</compile_context>

<pallas_src>
import functools

import jax
import jax.numpy as jnp
from jax import lax
from jax.experimental import pallas as pl
from jax.experimental.pallas import tpu as pltpu


_LANE = 128
_BLOCK_BUDGET_BYTES = 4 * 1024 * 1024   # per block, per buffer (f32-equivalent)
_VMEM_LIMIT_BYTES = 32 * 1024 * 1024    # safe on v5e/v6e (128 MiB) and v7x (64 MiB)


def _round_up(x, m):
    return ((x + m - 1) // m) * m


def _sublane_align(itemsize):
    # 8 for f32, 16 for bf16, 32 for int8 (sub-32-bit dtypes pack along sublanes).
    return max(8, 8 * (4 // max(itemsize, 1)))


def _avg_kernel(x_ref, o_ref, *, num_summed):
    """One (bt, tl) block of the (B, hw) problem.

    Every row is the pass-through x[b, 0] / C (one native-dtype VPU multiply).
    The batch block holding rows [0, C) additionally overwrites row 0 with the
    f32 cross-batch sum of the first C rows: one XLU sublane reduce + a single
    1-sublane store.
    """
    inv = 1.0 / num_summed

    # Pass-through scale in the input's native dtype (bf16 VPU on v6e/v7x).
    o_ref[...] = (x_ref[...] * jnp.asarray(inv, dtype=x_ref.dtype)).astype(o_ref.dtype)

    @pl.when(pl.program_id(0) == 0)
    def _():
        bt = x_ref.shape[0]
        sub = _sublane_align(jnp.dtype(x_ref.dtype).itemsize)
        c_pad = min(bt, _round_up(num_summed, sub))      # sublane-aligned head
        head = x_ref[0:c_pad, :].astype(jnp.float32)
        if c_pad != num_summed:                          # static branch
            row = lax.broadcasted_iota(jnp.int32, head.shape, 0)
            head = jnp.where(row < num_summed, head, 0.0)
        summed = jnp.sum(head, axis=0, keepdims=True) * jnp.float32(inv)
        o_ref[0:1, :] = summed.astype(o_ref.dtype)       # 1-sublane overwrite


def _pick_tiles(B, C, hw, itemsize):
    """Pick (batch_tile, lane_tile) from a per-block VMEM budget."""
    sub = _sublane_align(itemsize)
    tl_full = _round_up(hw, _LANE)

    # Batch block 0 must cover rows [0, C); rows are a multiple of `sub` or == B.
    bt = _round_up(C, sub)
    if bt >= B:
        bt = B

    # Lane-dense first: give lanes as much of the budget as possible.
    lanes_budget = (_BLOCK_BUDGET_BYTES // (max(bt, 1) * 4)) // _LANE * _LANE
    tl = min(tl_full, max(_LANE, lanes_budget))

    # If lanes already cover hw, spend the remaining budget on batch rows.
    if tl == tl_full and bt < B:
        rows_budget = (_BLOCK_BUDGET_BYTES // (tl * 4)) // sub * sub
        bt = B if rows_budget >= B else max(bt, rows_budget)

    return bt, tl


def avg_forward(x):
    """Pallas implementation of Avg.forward: (B, C, H, W) -> (B, 1, H, W)."""
    B, C, H, W = x.shape
    assert C <= B, "original module indexes dim 0 with dim-1's extent (needs C <= B)"
    hw = H * W
    itemsize = jnp.dtype(x.dtype).itemsize

    # Free metadata reshape: channel 0 of batch row b occupies lanes [0, hw) of
    # x2[b]; the lane grid only covers those lanes (channels >= 1 stay in HBM).
    x2 = x.reshape(B, C * hw)

    bt, tl = _pick_tiles(B, C, hw, itemsize)
    grid = (pl.cdiv(B, bt), pl.cdiv(hw, tl))

    cost = pl.CostEstimate(
        flops=2 * B * hw,
        transcendentals=0,
        bytes_accessed=2 * B * hw * itemsize,   # channel-0 slab in + output out
    )

    out = pl.pallas_call(
        functools.partial(_avg_kernel, num_summed=C),
        out_shape=jax.ShapeDtypeStruct((B, hw), x.dtype),
        grid=grid,
        in_specs=[pl.BlockSpec((bt, tl), lambda bi, li: (bi, li))],
        out_specs=pl.BlockSpec((bt, tl), lambda bi, li: (bi, li)),
        compiler_params=pltpu.CompilerParams(
            dimension_semantics=("parallel", "parallel"),
            vmem_limit_bytes=_VMEM_LIMIT_BYTES,
        ),
        cost_estimate=cost,
    )(x2)

    return out.reshape(B, 1, H, W)


def _reference(x):
    B, C, H, W = x.shape
    ref = x[:, 0, :, :] / C
    ref = ref.at[0].set(jnp.sum(x[:C, 0, :, :], axis=0) / C)
    return ref[:, None, :, :]


if __name__ == "__main__":
    key = jax.random.PRNGKey(0)

    # Primary case (module needs C <= B; use B = C = 4).
    B, C, H, W = 4, 4, 16, 16
    x = jax.random.normal(key, (B, C, H, W), dtype=jnp.float32)
    out = jax.block_until_ready(avg_forward(x))
    ref = _reference(x)
    assert out.shape == (B, 1, H, W)
    assert jnp.allclose(out, ref, atol=1e-5, rtol=1e-5)

    # Secondary case: exercises batch tiling alignment, C not a multiple of 8,
    # and an hw that is not a multiple of 128 (masked boundary block).
    B2, C2, H2, W2 = 16, 5, 20, 24
    x2 = jax.random.normal(jax.random.PRNGKey(1), (B2, C2, H2, W2), dtype=jnp.float32)
    out2 = jax.block_until_ready(avg_forward(x2))
    ref2 = _reference(x2)
    assert out2.shape == (B2, 1, H2, W2)
    assert jnp.allclose(out2, ref2, atol=1e-5, rtol=1e-5)

    print("KERNEL_OK")
</pallas_src>

<mosaic_0001>
module attributes {stable_mosaic.version = 11 : i64} {
  func.func @_avg_kernel(%arg0: i32, %arg1: i32, %arg2: memref<4x256xf32, #tpu.memory_space<vmem>>, %arg3: memref<4x256xf32, #tpu.memory_space<vmem>>) attributes {dimension_semantics = [#tpu.dimension_semantics<parallel>, #tpu.dimension_semantics<parallel>], iteration_bounds = array<i64: 1, 1>, scalar_prefetch = 0 : i64, scratch_operands = 0 : i64, tpu.core_type = #tpu.core_type<tc>, window_params = [{transform_indices = @transform_0, window_bounds = array<i64: 4, 256>}, {transform_indices = @transform_1, window_bounds = array<i64: 4, 256>}]} {
    %c0 = arith.constant 0 : index
    %c0_0 = arith.constant 0 : index
    %0 = vector.load %arg2[%c0, %c0_0] : memref<4x256xf32, #tpu.memory_space<vmem>>, vector<4x256xf32>
    %cst = arith.constant 2.500000e-01 : f32
    %1 = vector.broadcast %cst : f32 to vector<4x256xf32>
    %2 = arith.mulf %0, %1 : vector<4x256xf32>
    %c0_1 = arith.constant 0 : index
    %c0_2 = arith.constant 0 : index
    %3 = vector.load %arg3[%c0_1, %c0_2] : memref<4x256xf32, #tpu.memory_space<vmem>>, vector<4x256xf32>
    tpu.vector_store %arg3[%c0_1, %c0_2], %2 {strides = array<i32>} : memref<4x256xf32, #tpu.memory_space<vmem>>, vector<4x256xf32>,
    %c0_i32 = arith.constant 0 : i32
    %4 = arith.cmpi eq, %arg0, %c0_i32 : i32
    %5 = arith.extui %4 : i1 to i32
    %c0_i32_3 = arith.constant 0 : i32
    %6 = arith.cmpi ne, %5, %c0_i32_3 : i32
    scf.if %6 {
      %c0_4 = arith.constant 0 : index
      %c0_5 = arith.constant 0 : index
      %7 = vector.load %arg2[%c0_4, %c0_5] : memref<4x256xf32, #tpu.memory_space<vmem>>, vector<4x256xf32>
      %cst_6 = arith.constant dense<0.000000e+00> : vector<256xf32>
      %8 = vector.multi_reduction <add>, %7, %cst_6 [0] : vector<4x256xf32> to vector<256xf32>
      %9 = vector.shape_cast %8 : vector<256xf32> to vector<1x256xf32>
      %cst_7 = arith.constant 2.500000e-01 : f32
      %10 = vector.broadcast %cst_7 : f32 to vector<1x256xf32>
      %11 = arith.mulf %9, %10 : vector<1x256xf32>
      %c0_8 = arith.constant 0 : index
      %c0_9 = arith.constant 0 : index
      %12 = vector.load %arg3[%c0_8, %c0_9] : memref<4x256xf32, #tpu.memory_space<vmem>>, vector<1x256xf32>
      tpu.vector_store %arg3[%c0_8, %c0_9], %11 {strides = array<i32>} : memref<4x256xf32, #tpu.memory_space<vmem>>, vector<1x256xf32>,
    } else {
    }
    return
  }
  func.func @transform_0(%arg0: i32, %arg1: i32) -> (i32, i32) {
    %c0_i32 = arith.constant 0 : i32
    return %arg0, %arg1 : i32, i32
  }
  func.func @transform_1(%arg0: i32, %arg1: i32) -> (i32, i32) {
    %c0_i32 = arith.constant 0 : i32
    return %arg0, %arg1 : i32, i32
  }
}

</mosaic_0001>

<bundles_post_ra>
// kernel: tpu_custom_call.1
= control target key start
LH: loop header
LB: loop body
LE: loop exit
PB: predicated region body
PF: predicated region fallthrough
CT: control target
= control target key end

     0   :  { %6 = vsyncpa [#allocation3], 0  ;;  %s154_s0 = inlined_call_operand.hbm [shape: f32[4,1024], index: 0, kind: input, shape index: {}]   ;;  %s155_s1 = inlined_call_operand.hbm [shape: f32[4,256], index: 1, kind: output, shape index: {}]  }
   0x1   :  { %7 = vsyncpa [#allocation4], 0  ;;  %s13_s8 = sshll.u32 %s154_s0, 4  ;;  %s136_s9 = smov [#allocation2]   ;;  %s14_s8 = int_to_ptr.hbm [resolvable:$true] %s13_s8 }
   0x2   :  { %s15_s10 = sshll.u32 %s136_s9, 4  ;;  %s16_s10 = int_to_ptr.vmem [resolvable:$true] %s15_s10 }
   0x3   :  { %18 = dma.hbm_to_vmem [thread:$0]  %s14_s8, 128, %s16_s10, [#allocation3]  }
   0x4   :  { %132 = dma.done.wait [#allocation3], 128  }
   0x5   :  { %133 = vsyncadd [#allocation3], 4294967168  ;;  %v30_v0 = vld [vmem:[#allocation2] sm:$0xff]  ;;  %vm37_vm0 = vcmask 1043456   ;;  %v60_v18 = vlaneseq  ;;  %s137_s0 = smov [#allocation5]   ;;  %s72_s14 = sshll.u32 %s155_s1, 4  ;;  %s73_s14 = int_to_ptr.hbm [resolvable:$true] %s72_s14 }
   0x6   :  { %32 = vst [vmem:[#allocation1] ss:$2 sm:$0xff] %v30_v0  ;;  %v24_v1 = vmul.f32 0.25, %v30_v0  ;;  %s70_s11 = sshll.u32 %s137_s0, 4  ;;  %vm57_vm1 = vcmask 1040384   ;;  %s71_s11 = int_to_ptr.vmem [resolvable:$true] %s70_s11 }
   0x7   :  { %vm62_vm2 = vcmp.lt.s32.totalorder %v60_v18, 256 }
   0x8   :  { %25 = vst [vmem:[#allocation5] sm:$0xff] %v24_v1 }
   0xd   :  { %v33_v2 = vld.sshfl [vmem:[#allocation1] sm:$0xff pattern:$0x75316420]  ;;  %v34_v3 = vld.sshfl [vmem:[#allocation1 + $0x8] sm:$0xff pattern:$0x75316420] }
   0xe   :  { %v38_v4 = vsel %vm37_vm0, %v33_v2, 0.0  ;;  %v45_v5 = vsel %vm37_vm0, %v34_v3, 0.0 }
   0xf   :  { %v39_v6 = vrot.slane %v38_v4, 4  ;;  %v46_v7 = vrot.slane %v45_v5, 4 }
  0x11   :  { %v40_v8 = vadd.f32 %v39_v6, %v38_v4  ;;  %v47_v9 = vadd.f32 %v46_v7, %v45_v5 }
  0x13   :  { %v41_v10 = vrot.slane %v40_v8, 2  ;;  %v48_v11 = vrot.slane %v47_v9, 2 }
  0x15   :  { %v42_v12 = vadd.f32 %v41_v10, %v40_v8  ;;  %v49_v13 = vadd.f32 %v48_v11, %v47_v9 }
  0x17   :  { %v43_v14 = vrot.slane %v42_v12, 1  ;;  %v50_v15 = vrot.slane %v49_v13, 1 }
  0x19   :  { %v44_v16 = vadd.f32 %v43_v14, %v42_v12  ;;  %v51_v17 = vadd.f32 %v50_v15, %v49_v13 }
  0x1b   :  { %v53_v19 = vmul.f32 0.25, %v51_v17  ;;  %v52_v20 = vmul.f32 0.25, %v44_v16 }
  0x1d   :  { %v56_v21 = vrot.slane %v53_v19, 7 }
  0x1f   :  { %v58_v22 = vsel %vm57_vm1, %v52_v20, %v56_v21 }
  0x20   :  { %64 = vst.msk [vmem:[#allocation5] ss:$4 sm:$0x3] %vm62_vm2, %v58_v22 }
  0x21   :  { %75 = dma.vmem_to_hbm [thread:$0]  %s71_s11, 128, %s73_s14, [#allocation4]  }
  0x22   :  { %134 = dma.done.wait [#allocation4], 128  }
  0x23   :  { %135 = vsyncadd [#allocation4], 4294967168 }
  0x24   :  { %80 = vsyncpa [#allocation3], 1 }
  0x25   :  { %81 = vsyncpa [#allocation4], 1 }

</bundles_post_ra>
